<compile_context>
chip_gen: v5e
topology: v5e:2x2
jax: 0.10.0
libtpu: 0.0.40
codegen_flags: <defaults>
</compile_context>

<pallas_src>
import functools

import numpy as np
import jax
import jax.numpy as jnp
from jax import lax
from jax.experimental import pallas as pl
from jax.experimental.pallas import tpu as pltpu


def _round_up(x, m):
    return ((x + m - 1) // m) * m


def _pick_div_tile(total, unit, max_tile):
    """Largest multiple of `unit` that divides `total` and is <= max_tile."""
    t = min(total, max_tile)
    t = max((t // unit) * unit, unit)
    while total % t:
        t -= unit
    return t


def _vmem_budget_bytes():
    """Generation-aware VMEM budget: ~78% of physical capacity, which leaves
    headroom on v7x (64 MiB) while using most of v5e/v6e's 128 MiB."""
    cap = 128 * 1024 * 1024
    try:
        cap = int(pltpu.get_tpu_info().vmem_capacity_bytes)
    except Exception:
        pass
    return int(cap * 0.78)


def _build_src_tables(degrees, H, W, hw_pad):
    """Static per-angle nearest-neighbor source-index tables.

    Returns int32[num_angles, 1, hw_pad]; entry = flattened input pixel feeding
    that output pixel, or -1 for out-of-bounds / lane padding (-> fill = 0).
    Convention: rotation about pixel-center ((W-1)/2, (H-1)/2), nearest
    interpolation via round-half-to-even, expand=False, fill=0 (matches
    torchvision rotate on tensors up to the usual center/rounding convention).
    """
    cy = (H - 1) * 0.5
    cx = (W - 1) * 0.5
    row_o, col_o = np.meshgrid(
        np.arange(H, dtype=np.float64),
        np.arange(W, dtype=np.float64),
        indexing="ij",
    )
    dx = col_o - cx
    dy = row_o - cy
    tables = []
    for deg in degrees:
        rad = np.deg2rad(float(deg))
        c, s = np.cos(rad), np.sin(rad)
        xs = c * dx - s * dy + cx          # inverse affine map (y-down coords)
        ys = s * dx + c * dy + cy
        sx = np.rint(xs).astype(np.int64)  # round-half-to-even
        sy = np.rint(ys).astype(np.int64)
        valid = (sx >= 0) & (sx < W) & (sy >= 0) & (sy < H)
        src = np.where(valid, sy * W + sx, -1).astype(np.int32).reshape(-1)
        padded = np.full((hw_pad,), -1, dtype=np.int32)
        padded[: H * W] = src
        tables.append(padded)
    return np.stack(tables, axis=0)[:, None, :]   # (A, 1, hw_pad)


def _rotate_kernel(idx_ref, src_ref, x_ref, o_ref, acc_ref, st_ref,
                   *, tile_k, cache_st):
    """idx_ref: SMEM (1,)  int32            -- chosen angle (used by index_maps only)
       src_ref: VMEM (1, 1, TILE_P) int32   -- source pixel per output pixel (-1 = fill 0)
       x_ref  : VMEM (TILE_M, TILE_K)       -- flattened images, native dtype
       o_ref  : VMEM (TILE_M, TILE_P)       -- rotated output tile
       acc_ref: VMEM (TILE_M, TILE_P) f32   -- K-accumulator
       st_ref : VMEM (n_slabs, TILE_K, TILE_P) bf16 -- one-hot selection slab(s)"""
    del idx_ref
    m_i = pl.program_id(1)
    k_i = pl.program_id(2)
    n_k = pl.num_programs(2)
    slab = k_i if cache_st else 0

    def _build_st():
        src = src_ref[0]                                           # (1, TILE_P)
        q = lax.broadcasted_iota(jnp.int32, st_ref.shape[1:], 0) + k_i * tile_k
        # One-hot selection via a single broadcast compare; exact in bf16.
        st_ref[slab] = (q == src).astype(st_ref.dtype)

    if cache_st:
        # Rebuild only for the first M tile of each output-column tile.
        pl.when(m_i == 0)(_build_st)
    else:
        _build_st()

    @pl.when(k_i == 0)
    def _init():
        acc_ref[...] = jnp.zeros_like(acc_ref)

    lhs = x_ref[...]
    rhs = st_ref[slab]
    if lhs.dtype != rhs.dtype:     # f32 inputs stay f32 (exact); bf16 stays bf16
        rhs = rhs.astype(lhs.dtype)
    acc_ref[...] += jnp.dot(lhs, rhs, preferred_element_type=jnp.float32)

    @pl.when(k_i == n_k - 1)
    def _store():
        o_ref[...] = acc_ref[...].astype(o_ref.dtype)


def discrete_random_rotation(x, degrees, key):
    """x: [N, C, H, W]. Picks a uniformly random angle from `degrees` (uniform
    dice + argmax, like the PyTorch module) and rotates with nearest
    interpolation, expand=False, fill=0."""
    N, C, H, W = x.shape
    HW = H * W
    M = N * C
    HW_pad = _round_up(HW, 128)

    if x.dtype not in (jnp.float32, jnp.bfloat16):
        x = x.astype(jnp.float32)
    out_dtype = x.dtype

    # --- plain-JAX glue: random angle choice + static table ------------------
    dice = jax.random.uniform(key, (len(degrees),))
    idx = jnp.argmax(dice).astype(jnp.int32).reshape(1)   # scalar-prefetch operand
    src_tables = jnp.asarray(_build_src_tables(degrees, H, W, HW_pad))

    x_flat = x.reshape(M, HW)
    if HW_pad != HW:                      # lane padding only; M stays ragged
        x_flat = jnp.pad(x_flat, ((0, 0), (0, HW_pad - HW)))

    budget = _vmem_budget_bytes()
    big_vmem = budget > 80 * 1024 * 1024  # 128-MiB parts (v5e/v6e) vs v7x

    # --- tile plan ------------------------------------------------------------
    # Lane-dense output tiles (multiples of 128 -> unmasked stores).
    TILE_P = _pick_div_tile(HW_pad, 128, 1024 if big_vmem else 512)
    # Guarantee >=2 blocks on the parallel column axis so both v7x TCs work.
    if HW_pad // TILE_P < 2 and HW_pad >= 256:
        TILE_P = _pick_div_tile(HW_pad, 128, HW_pad // 2)
    # Contraction (input pixel) tiling bounds VMEM independently of image size.
    TILE_K = _pick_div_tile(HW_pad, 128, 2048 if big_vmem else 1024)
    TILE_M = max(8, (min(M, 256) // 8) * 8) if M >= 8 else M
    grid_p = HW_pad // TILE_P
    grid_m = pl.cdiv(M, TILE_M)
    grid_k = HW_pad // TILE_K

    # Cache all K slabs of St across M tiles only when they fit comfortably.
    cache_st = (HW_pad * TILE_P * 2) <= budget // 4
    n_slabs = grid_k if cache_st else 1

    itemsize = jnp.dtype(out_dtype).itemsize
    vmem_est = (2 * TILE_M * TILE_K * itemsize        # x block (double-buffered)
                + 2 * TILE_M * TILE_P * itemsize      # out block
                + 2 * 8 * TILE_P * 4                  # src row block
                + TILE_M * TILE_P * 4                 # f32 accumulator
                + n_slabs * TILE_K * TILE_P * 2       # bf16 St slab(s)
                + 4 * TILE_K * TILE_P * 4)            # iota/compare temporaries
    vmem_limit = int(min(budget, max(2 * vmem_est, 16 * 1024 * 1024)))

    out_flat = pl.pallas_call(
        functools.partial(_rotate_kernel, tile_k=TILE_K, cache_st=cache_st),
        out_shape=jax.ShapeDtypeStruct((M, HW_pad), out_dtype),
        grid_spec=pltpu.PrefetchScalarGridSpec(
            num_scalar_prefetch=1,
            grid=(grid_p, grid_m, grid_k),
            in_specs=[
                # Angle-selected row of the source table (P2 scalar prefetch).
                pl.BlockSpec((1, 1, TILE_P), lambda p, m, k, idx: (idx[0], 0, p)),
                # Input image slab for this (M, K) tile.
                pl.BlockSpec((TILE_M, TILE_K), lambda p, m, k, idx: (m, k)),
            ],
            out_specs=pl.BlockSpec((TILE_M, TILE_P), lambda p, m, k, idx: (m, p)),
            scratch_shapes=[
                pltpu.VMEM((TILE_M, TILE_P), jnp.float32),
                pltpu.VMEM((n_slabs, TILE_K, TILE_P), jnp.bfloat16),
            ],
        ),
        compiler_params=pltpu.CompilerParams(
            dimension_semantics=(
                "parallel",
                "arbitrary" if cache_st else "parallel",
                "arbitrary",
            ),
            vmem_limit_bytes=vmem_limit,
        ),
    )(idx, src_tables, x_flat)

    return out_flat[:, :HW].reshape(N, C, H, W)


if __name__ == "__main__":
    key = jax.random.PRNGKey(0)
    k_x, k_dice = jax.random.split(key)

    # Small NCHW input consistent with an image-augmentation module.
    N, C, H, W = 2, 4, 16, 16
    x = jax.random.normal(k_x, (N, C, H, W), dtype=jnp.float32)

    degrees = [0.0, 33.0, 90.0, 180.0, 270.0]

    out = discrete_random_rotation(x, degrees, k_dice)
    out = jax.block_until_ready(out)

    assert out.shape == (N, C, H, W)
    assert out.dtype == jnp.float32

    # Exact reference: same RNG stream -> same chosen angle; pure-numpy gather
    # with the same static source table.
    dice = jax.random.uniform(k_dice, (len(degrees),))
    idx = int(jnp.argmax(dice))
    tbl = _build_src_tables(degrees, H, W, _round_up(H * W, 128))[idx, 0, : H * W]
    x_np = np.asarray(x).reshape(N * C, H * W)
    gathered = x_np[:, np.maximum(tbl, 0)]
    ref = np.where(tbl[None, :] >= 0, gathered, 0.0).reshape(N, C, H, W)
    np.testing.assert_allclose(np.asarray(out), ref, rtol=1e-6, atol=1e-6)
    print("KERNEL_OK")
</pallas_src>

<mosaic_0001>
module attributes {stable_mosaic.version = 11 : i64} {
  func.func @_rotate_kernel(%arg0: i32, %arg1: i32, %arg2: i32, %arg3: memref<1xi32, #tpu.memory_space<smem>>, %arg4: memref<1x1x128xi32, #tpu.memory_space<vmem>>, %arg5: memref<8x256xf32, #tpu.memory_space<vmem>>, %arg6: memref<8x128xf32, #tpu.memory_space<vmem>>, %arg7: memref<8x128xf32, #tpu.memory_space<vmem>>, %arg8: memref<1x256x128xbf16, #tpu.memory_space<vmem>>) attributes {dimension_semantics = [#tpu.dimension_semantics<parallel>, #tpu.dimension_semantics<arbitrary>, #tpu.dimension_semantics<arbitrary>], iteration_bounds = array<i64: 2, 1, 1>, scalar_prefetch = 1 : i64, scratch_operands = 2 : i64, tpu.core_type = #tpu.core_type<tc>, window_params = [{transform_indices = @transform_0, window_bounds = array<i64: 1, 1, 128>}, {transform_indices = @transform_1, window_bounds = array<i64: 8, 256>}, {transform_indices = @transform_2, window_bounds = array<i64: 8, 128>}]} {
    %c0_i32 = arith.constant 0 : i32
    %0 = arith.cmpi eq, %arg1, %c0_i32 : i32
    %1 = arith.extui %0 : i1 to i32
    %c0_i32_0 = arith.constant 0 : i32
    %2 = arith.cmpi ne, %1, %c0_i32_0 : i32
    scf.if %2 {
      %c0_12 = arith.constant 0 : index
      %c0_13 = arith.constant 0 : index
      %c0_14 = arith.constant 0 : index
      %18 = vector.load %arg4[%c0_12, %c0_13, %c0_14] : memref<1x1x128xi32, #tpu.memory_space<vmem>>, vector<1x1x128xi32>
      %19 = vector.shape_cast %18 : vector<1x1x128xi32> to vector<1x128xi32>
      %20 = tpu.iota {dimensions = array<i32: 0>} : vector<256x128xi32>
      %c256_i32 = arith.constant 256 : i32
      %21 = arith.muli %arg2, %c256_i32 : i32
      %22 = vector.broadcast %21 : i32 to vector<256x128xi32>
      %23 = arith.addi %20, %22 : vector<256x128xi32>
      %24 = vector.broadcast %19 : vector<1x128xi32> to vector<256x128xi32>
      %25 = arith.cmpi eq, %23, %24 : vector<256x128xi32>
      %26 = arith.extui %25 : vector<256x128xi1> to vector<256x128xi32>
      %27 = arith.sitofp %26 : vector<256x128xi32> to vector<256x128xf32>
      %28 = arith.truncf %27 : vector<256x128xf32> to vector<256x128xbf16>
      %29 = arith.index_cast %arg2 : i32 to index
      %c0_15 = arith.constant 0 : index
      %c0_16 = arith.constant 0 : index
      %30 = vector.load %arg8[%29, %c0_15, %c0_16] : memref<1x256x128xbf16, #tpu.memory_space<vmem>>, vector<1x256x128xbf16>
      %31 = vector.shape_cast %30 : vector<1x256x128xbf16> to vector<256x128xbf16>
      %32 = vector.shape_cast %28 : vector<256x128xbf16> to vector<1x256x128xbf16>
      tpu.vector_store %arg8[%29, %c0_15, %c0_16], %32 {strides = array<i32>} : memref<1x256x128xbf16, #tpu.memory_space<vmem>>, vector<1x256x128xbf16>,
    } else {
    }
    %c0_i32_1 = arith.constant 0 : i32
    %3 = arith.cmpi eq, %arg2, %c0_i32_1 : i32
    %4 = arith.extui %3 : i1 to i32
    %c0_i32_2 = arith.constant 0 : i32
    %5 = arith.cmpi ne, %4, %c0_i32_2 : i32
    scf.if %5 {
      %cst_12 = arith.constant 0.000000e+00 : f32
      %18 = vector.broadcast %cst_12 : f32 to vector<8x128xf32>
      %c0_13 = arith.constant 0 : index
      %c0_14 = arith.constant 0 : index
      %19 = vector.load %arg7[%c0_13, %c0_14] : memref<8x128xf32, #tpu.memory_space<vmem>>, vector<8x128xf32>
      tpu.vector_store %arg7[%c0_13, %c0_14], %18 {strides = array<i32>} : memref<8x128xf32, #tpu.memory_space<vmem>>, vector<8x128xf32>,
    } else {
    }
    %c0 = arith.constant 0 : index
    %c0_3 = arith.constant 0 : index
    %6 = vector.load %arg5[%c0, %c0_3] : memref<8x256xf32, #tpu.memory_space<vmem>>, vector<8x256xf32>
    %7 = arith.index_cast %arg2 : i32 to index
    %c0_4 = arith.constant 0 : index
    %c0_5 = arith.constant 0 : index
    %8 = vector.load %arg8[%7, %c0_4, %c0_5] : memref<1x256x128xbf16, #tpu.memory_space<vmem>>, vector<1x256x128xbf16>
    %9 = vector.shape_cast %8 : vector<1x256x128xbf16> to vector<256x128xbf16>
    %10 = arith.extf %9 : vector<256x128xbf16> to vector<256x128xf32>
    %c0_6 = arith.constant 0 : index
    %c0_7 = arith.constant 0 : index
    %11 = vector.load %arg7[%c0_6, %c0_7] : memref<8x128xf32, #tpu.memory_space<vmem>>, vector<8x128xf32>
    %cst = arith.constant dense<0.000000e+00> : vector<8x128xf32>
    %12 = tpu.matmul %6, %10, %cst {dimension_numbers = #tpu.dot_dimension_numbers<[1], [0], [0], [1], [0, 0, 1, 1], [], []>} : vector<8x256xf32>, vector<256x128xf32>, vector<8x128xf32> -> vector<8x128xf32>
    %13 = arith.addf %11, %12 : vector<8x128xf32>
    %c0_8 = arith.constant 0 : index
    %c0_9 = arith.constant 0 : index
    %14 = vector.load %arg7[%c0_8, %c0_9] : memref<8x128xf32, #tpu.memory_space<vmem>>, vector<8x128xf32>
    tpu.vector_store %arg7[%c0_8, %c0_9], %13 {strides = array<i32>} : memref<8x128xf32, #tpu.memory_space<vmem>>, vector<8x128xf32>,
    %c0_i32_10 = arith.constant 0 : i32
    %15 = arith.cmpi eq, %arg2, %c0_i32_10 : i32
    %16 = arith.extui %15 : i1 to i32
    %c0_i32_11 = arith.constant 0 : i32
    %17 = arith.cmpi ne, %16, %c0_i32_11 : i32
    scf.if %17 {
      %c0_12 = arith.constant 0 : index
      %c0_13 = arith.constant 0 : index
      %18 = vector.load %arg7[%c0_12, %c0_13] : memref<8x128xf32, #tpu.memory_space<vmem>>, vector<8x128xf32>
      %c0_14 = arith.constant 0 : index
      %c0_15 = arith.constant 0 : index
      %19 = vector.load %arg6[%c0_14, %c0_15] : memref<8x128xf32, #tpu.memory_space<vmem>>, vector<8x128xf32>
      tpu.vector_store %arg6[%c0_14, %c0_15], %18 {strides = array<i32>} : memref<8x128xf32, #tpu.memory_space<vmem>>, vector<8x128xf32>,
    } else {
    }
    return
  }
  func.func @transform_0(%arg0: i32, %arg1: i32, %arg2: i32, %arg3: memref<1xi32, #tpu.memory_space<smem>>) -> (i32, i32, i32) {
    %c0 = arith.constant 0 : index
    %0 = memref.load %arg3[%c0] : memref<1xi32, #tpu.memory_space<smem>>
    %c0_i32 = arith.constant 0 : i32
    %c0_i32_0 = arith.constant 0 : i32
    return %0, %c0_i32, %arg0 : i32, i32, i32
  }
  func.func @transform_1(%arg0: i32, %arg1: i32, %arg2: i32, %arg3: memref<1xi32, #tpu.memory_space<smem>>) -> (i32, i32) {
    %c0_i32 = arith.constant 0 : i32
    return %arg1, %arg2 : i32, i32
  }
  func.func @transform_2(%arg0: i32, %arg1: i32, %arg2: i32, %arg3: memref<1xi32, #tpu.memory_space<smem>>) -> (i32, i32) {
    %c0_i32 = arith.constant 0 : i32
    return %arg1, %arg0 : i32, i32
  }
}

</mosaic_0001>

<bundles_post_ra>
// kernel: tpu_custom_call.1
= control target key start
LH: loop header
LB: loop body
LE: loop exit
PB: predicated region body
PF: predicated region fallthrough
CT: control target
= control target key end

     0   :  { %s1489_s0 = inlined_call_operand.<no memory space> [shape: s32[1], index: 0, kind: input, shape index: {}]   ;;  %s1490_s1 = inlined_call_operand.hbm [shape: s32[5,1,256], index: 1, kind: input, shape index: {}]   ;;  %s1491_s2 = inlined_call_operand.hbm [shape: f32[8,256], index: 2, kind: input, shape index: {}]   ;;  %s1492_s3 = inlined_call_operand.hbm [shape: f32[8,256], index: 3, kind: output, shape index: {}]  }
   0x1   :  { %1495 = sst [smem:[#allocation17_spill]] %s1491_s2 }
   0x2   :  { %8 = sst [smem:[#allocation5]] %s1489_s0 }
   0x3   :  { %9 = vsyncpa [#allocation7], 0 }
   0x4   :  { %11 = vsyncpa [#allocation7 + $0x1], 0 }
   0x5   :  { %12 = vsyncpa [#allocation10], 0 }
   0x6   :  { %13 = vsyncpa [#allocation8], 0 }
   0x7   :  { %15 = vsyncpa [#allocation8 + $0x1], 0  ;;  %s1207_s14 = smov 0   ;;  %s1209_s15 = smov 0  }
   0x8   :  { %s1211_s16 = smov 0   ;;  %s1213_s17 = smov 0  }
   0x9   :  { %s1215_s18 = smov 0   ;;  %s1217_s19 = smov 0  }
   0xa   :  { %s1219_s20 = smov 0   ;;  %s1221_s0 = smov 0  }
   0xb   :  { %s1223_s21 = smov 0  }
   0xc LB: > { %s692_s22 = sadd.s32 4294967295, %s1180_s21   ;;  %s693_s23 = sadd.s32 4294967294, %s1180_s21   ;;  %s1180_s21 = sphi %s1223_s21, %s21_s21   ;;  %s1176_s0 = sphi %s1221_s0, %s1516_s0   ;;  %s1172_s20 = sphi %s1219_s20, %s1515_s20   ;;  %s1168_s19 = sphi %s1217_s19, %s1514_s19   ;;  %s1164_s18 = sphi %s1215_s18, %s1513_s18   ;;  %s1160_s17 = sphi %s1213_s17, %s1512_s17   ;;  %s1156_s16 = sphi %s1211_s16, %s1511_s16   ;;  %s1152_s15 = sphi %s1209_s15, %s1510_s15   ;;  %s1148_s14 = sphi %s1207_s14, %s1509_s14  }
   0xd   : > { %p64_p0 = scmp.ne.s32.totalorder %s1164_s18, %s1160_s17  ;;  %p1253_p1 = scmp.eq.s32.totalorder %s692_s22, 0 }
   0xe   : > { %p117_p2 = scmp.ne.s32.totalorder %s1156_s16, %s1152_s15  ;;  %p118_p3 = scmp.eq.s32.totalorder %s692_s22, 1 }
   0xf   : > { %p1261_p4 = por %p1253_p1, %p64_p0  ;;  %p123_p5 = scmp.ne.s32.totalorder %s1152_s15, %s1148_s14 }
  0x10   : > { %p1267_p6 = por %p118_p3, %p117_p2  ;;  %p124_p7 = scmp.eq.s32.totalorder %s693_s23, 1 }
  0x11   : > { %p694_p8 = scmp.ge.s32.totalorder %s1180_s21, 1  ;;  %p131_p9 = scmp.lt.s32.totalorder %s1180_s21, 3 }
  0x12   : > { %p1273_p10 = por %p124_p7, %p123_p5  ;;  %s1502_s2 = sld [smem:[#allocation17_spill]] }
  0x13   : > { %p1277_p11 = pnand %p694_p8, %p131_p9  ;;  %s1182_s5 = smov [#allocation9]  }
  0x14   : > { %s1499_s27 = scalar_select %p1273_p10, 1, 0 }
  0x15   : > { %p919_p12 = pneg %p1277_p11  ;;  %s150_s6 = sshll.u32 %s1182_s5, 4  ;;  %s151_s6 = int_to_ptr.vmem [resolvable:$true] %s150_s6 }
  0x16   : > { %1500 = sst [smem:[#allocation15_spill]] %s1499_s27  ;;  %s40_s7 = sadd.s32 1, %s1176_s0 }
  0x17   : > { %p920_p0 = pnand %p919_p12, %p1253_p1  ;;  %s44_s8 = sld [smem:[#allocation5]] }
  0x18   : > { %s148_s4 = sshll.u32 %s1502_s2, 4  ;;  %p42_p2 = scmp.ge.s32.totalorder %s40_s7, 2  ;;  %s149_s4 = int_to_ptr.hbm [resolvable:$true] %s148_s4 }
  0x19   : > { %922 = dma.hbm_to_vmem [thread:$0]  (!%p920_p0), %s149_s4, 256, %s151_s6, [#allocation10]  }
  0x1a   : > { %s51_s9 = sadd.s32 1, %s1168_s19  ;;  %p58_p3 = scmp.ne.s32.totalorder %s1168_s19, %s1164_s18 }
  0x1b   : > { %p59_p5 = scmp.eq.s32.totalorder %s1180_s21, 0  ;;  %s1518_s7 = smov (%p42_p2, %s40_s7), 0 }
  0x1c   : > { %1503 = sst [smem:[#allocation16_spill]] %s1518_s7  ;;  %s107_s11 = sadd.s32 1, %s1156_s16 }
  0x1d   : > { %p1296_p7 = por %p59_p5, %p58_p3  ;;  %s47_s12 = ssub.s32 %s1176_s0, %s1518_s7 }
  0x1e   : > { %p932_p8 = scmp.lt.s32.totalorder %s1180_s21, 2  ;;  %p105_p9 = scmp.eq.s32.totalorder %s47_s12, 0 }
  0x1f   : > { %s161_s13 = sand.u32 1, %s1168_s19   ;;  %s697_s23 = sshll.u32 %s44_s8, 1 }
  0x20   : > { %s1306_s17 = scalar_select %p105_p9, %s1156_s16, %s107_s11  }
  0x21   : > { %s1309_s22 = scalar_select %p105_p9, %s1168_s19, %s51_s9  }
  0x22   : > { %s169_s29 = sadd.s32 %s1176_s0, %s697_s23  ;;  %s164_s30 = scalar_lea.vmem [#allocation6], %s161_s13 }
  0x23   : > { %s174_s4 = sshll.u32 %s164_s30, 4  ;;  %s170_s2 = scalar_lea.hbm %s1490_s1, %s169_s29  ;;  %s175_s4 = int_to_ptr.vmem [resolvable:$true] %s174_s4 }
  0x24   : > { %s172_s27 = sshll.u32 %s170_s2, 4  ;;  %p1317_p12 = pnand %p932_p8, %p1296_p7  ;;  %s173_s27 = int_to_ptr.hbm [resolvable:$true] %s172_s27 }
  0x25   : > { %s162_s11 = scalar_lea.sflag [#allocation7], %s161_s13  ;;  %s1040_s9 = sshra.s32 %s173_s27, 4  ;;  %s1041_s9 = int_to_ptr.hbm [resolvable:$true] %s1040_s9 }
  0x26   : > { %s1042_s8 = scalar_lea.hbm %s1041_s9, 1  ;;  %p1044_p2 = pneg %p1317_p12 }
  0x27   : > { %p1043_p0 = scmp.ne.s32.totalorder %s1041_s9, %s1042_s8  ;;  %s1047_s2 = scalar_lea.hbm %s1490_s1, 10 }
  0x28   : > { %p1048_p7 = scmp.lt.s32.totalorder %s1041_s9, %s1490_s1  ;;  %p1049_p8 = scmp.lt.s32.totalorder %s1047_s2, %s1042_s8 }
  0x29   : > { %p1045_p3 = pnand %p1044_p2, %p1043_p0 }
  0x2a   : > { %p1050_p9 = por %p1049_p8, %p1048_p7 }
  0x2b   : > { %p1046_p5 = pneg %p1045_p3 }
  0x2d   : > { %p1051_p13 = pnand %p1050_p9, %p1046_p5 }
  0x2f   : > { %1054 = shalt.err (!%p1051_p13)
}
  0x30   : > { %926 = dma.hbm_to_vmem [thread:$0]  (!%p1317_p12), %s173_s27, 16, %s175_s4, %s162_s11  }
  0x31   : > { %183 = sbr.rel (%p1277_p11) target bundleno = 226 (0xe2), region = 28  ;;  %s185_s13 = sand.u32 (!%p1277_p11), 1, %s1164_s18  }
  0x32   : > { %s186_s30 = scalar_lea.sflag (!%p1277_p11), [#allocation7], %s185_s13  ;;  %s188_s5 = scalar_lea.vmem (!%p1277_p11), [#allocation6], %s185_s13 }
  0x36   : > { %1135 = dma.done.wait (%p1261_p4), %s186_s30, 16  }
  0x37   : > { %1137 = vsyncadd (%p1261_p4), %s186_s30, 4294967280 }
  0x38   : > { %1139 = dma.done.wait (%p1253_p1), [#allocation10], 256  }
  0x39   : > { %1141 = vsyncadd (%p1253_p1), [#allocation10], 4294967040  ;;  %v221_v0 = vlaneseq  ;;  %v1348_v6 = vld [vmem:[%s188_s5] ss:$0 sm:$0xff]  ;;  %v1183_v11 = vmov 1.0   ;;  %v457_v35 = vld [vmem:[#allocation9] sm:$0xff] }
  0x3a   : > { %v458_v36 = vld [vmem:[#allocation9 + $0x8] sm:$0xff]  ;;  %s211_s24 = sand.u32 1, %s1152_s15   ;;  %s734_s27 = sshll.u32 %s1172_s20, 3 }
  0x3b   : > { %v1342_v1 = vshrl.u32 %v221_v0, 7  ;;  %s700_s25 = sshll.u32 %s211_s24, 3  ;;  %s587_s4 = scalar_lea.hbm %s1492_s3, %s734_s27 }
  0x3c   : > { %s213_s6 = scalar_lea.vmem [#allocation11], %s700_s25  ;;  %s591_s9 = sshll.u32 %s587_s4, 4  ;;  %s592_s9 = int_to_ptr.hbm [resolvable:$true] %s591_s9 }
  0x3d   : > { %v237_v2 = vadd.s32 120, %v1342_v1  ;;  %v253_v3 = vadd.s32 248, %v1342_v1  ;;  %v236_v4 = vadd.s32 112, %v1342_v1  ;;  %v252_v5 = vadd.s32 240, %v1342_v1  ;;  %s589_s11 = sshll.u32 %s213_s6, 4  ;;  %s575_s8 = scalar_lea.sflag [#allocation8], %s211_s24  ;;  %s590_s11 = int_to_ptr.vmem [resolvable:$true] %s589_s11 }
  0x3e   : > { %v235_v7 = vadd.s32 104, %v1342_v1  ;;  %v251_v8 = vadd.s32 232, %v1342_v1  ;;  %v234_v9 = vadd.s32 96, %v1342_v1  ;;  %v250_v10 = vadd.s32 224, %v1342_v1  ;;  %s1084_s12 = sshra.s32 %s592_s9, 4  ;;  %s1090_s10 = scalar_lea.hbm %s1492_s3, 16  ;;  %s1085_s12 = int_to_ptr.hbm [resolvable:$true] %s1084_s12 }
  0x3f   : > { %vm304_vm0 = vcmp.eq.s32.totalorder %v237_v2, %v1348_v6  ;;  %vm320_vm1 = vcmp.eq.s32.totalorder %v253_v3, %v1348_v6  ;;  %vm303_vm2 = vcmp.eq.s32.totalorder %v236_v4, %v1348_v6  ;;  %vm319_vm3 = vcmp.eq.s32.totalorder %v252_v5, %v1348_v6  ;;  %s1086_s23 = scalar_lea.hbm %s1085_s12, 8  ;;  %p1091_p13 = scmp.lt.s32.totalorder %s1085_s12, %s1492_s3 }
  0x40   : > { %879 = vmatpush.msk.msra.mxu0 %vm304_vm0, %v1183_v11  ;;  %895 = vmatpush.msk.msra.mxu1 %vm320_vm1, %v1183_v11  ;;  %vm302_vm4 = vcmp.eq.s32.totalorder %v235_v7, %v1348_v6  ;;  %vm318_vm5 = vcmp.eq.s32.totalorder %v251_v8, %v1348_v6  ;;  %v233_v12 = vadd.s32 88, %v1342_v1  ;;  %v249_v13 = vadd.s32 216, %v1342_v1  ;;  %p1087_p1 = scmp.ne.s32.totalorder %s1085_s12, %s1086_s23  ;;  %p1092_p12 = scmp.lt.s32.totalorder %s1090_s10, %s1086_s23 }
  0x41   : > { %vm301_vm6 = vcmp.eq.s32.totalorder %v234_v9, %v1348_v6  ;;  %vm317_vm7 = vcmp.eq.s32.totalorder %v250_v10, %v1348_v6  ;;  %v232_v14 = vadd.s32 80, %v1342_v1  ;;  %v248_v15 = vadd.s32 208, %v1342_v1 }
  0x42   : > { %880 = vmatpush.msk.msra.mxu0 %vm303_vm2, %v1183_v11  ;;  %896 = vmatpush.msk.msra.mxu1 %vm319_vm3, %v1183_v11  ;;  %vm300_vm8 = vcmp.eq.s32.totalorder %v233_v12, %v1348_v6  ;;  %vm316_vm9 = vcmp.eq.s32.totalorder %v249_v13, %v1348_v6  ;;  %v231_v16 = vadd.s32 72, %v1342_v1  ;;  %v247_v17 = vadd.s32 200, %v1342_v1  ;;  %p1088_p4 = pnand %p1087_p1, %p1267_p6  ;;  %p1093_p0 = por %p1092_p12, %p1091_p13 }
  0x43   : > { %vm299_vm10 = vcmp.eq.s32.totalorder %v232_v14, %v1348_v6  ;;  %vm315_vm11 = vcmp.eq.s32.totalorder %v248_v15, %v1348_v6  ;;  %v230_v18 = vadd.s32 64, %v1342_v1  ;;  %v246_v19 = vadd.s32 192, %v1342_v1 }
  0x44   : > { %881 = vmatpush.msk.msra.mxu0 %vm302_vm4, %v1183_v11  ;;  %897 = vmatpush.msk.msra.mxu1 %vm318_vm5, %v1183_v11  ;;  %vm298_vm12 = vcmp.eq.s32.totalorder %v231_v16, %v1348_v6  ;;  %vm314_vm13 = vcmp.eq.s32.totalorder %v247_v17, %v1348_v6  ;;  %v229_v20 = vadd.s32 56, %v1342_v1  ;;  %v245_v21 = vadd.s32 184, %v1342_v1  ;;  %p1089_p11 = pneg %p1088_p4 }
  0x45   : > { %vm297_vm14 = vcmp.eq.s32.totalorder %v230_v18, %v1348_v6  ;;  %vm313_vm15 = vcmp.eq.s32.totalorder %v246_v19, %v1348_v6  ;;  %v228_v22 = vadd.s32 48, %v1342_v1  ;;  %v244_v23 = vadd.s32 176, %v1342_v1 }
  0x46   : > { %882 = vmatpush.msk.msra.mxu0 %vm301_vm6, %v1183_v11  ;;  %898 = vmatpush.msk.msra.mxu1 %vm317_vm7, %v1183_v11  ;;  %vm296_vm0 = vcmp.eq.s32.totalorder %v229_v20, %v1348_v6  ;;  %vm312_vm1 = vcmp.eq.s32.totalorder %v245_v21, %v1348_v6  ;;  %v227_v24 = vadd.s32 40, %v1342_v1  ;;  %v243_v25 = vadd.s32 168, %v1342_v1  ;;  %p1094_p2 = pnand %p1093_p0, %p1089_p11 }
  0x47   : > { %vm295_vm2 = vcmp.eq.s32.totalorder %v228_v22, %v1348_v6  ;;  %vm311_vm3 = vcmp.eq.s32.totalorder %v244_v23, %v1348_v6  ;;  %v226_v26 = vadd.s32 32, %v1342_v1  ;;  %v242_v27 = vadd.s32 160, %v1342_v1 }
  0x48   : > { %883 = vmatpush.msk.msra.mxu0 %vm300_vm8, %v1183_v11  ;;  %899 = vmatpush.msk.msra.mxu1 %vm316_vm9, %v1183_v11  ;;  %vm294_vm4 = vcmp.eq.s32.totalorder %v227_v24, %v1348_v6  ;;  %vm310_vm5 = vcmp.eq.s32.totalorder %v243_v25, %v1348_v6  ;;  %v225_v28 = vadd.s32 24, %v1342_v1  ;;  %v241_v29 = vadd.s32 152, %v1342_v1 }
  0x49   : > { %vm293_vm6 = vcmp.eq.s32.totalorder %v226_v26, %v1348_v6  ;;  %vm309_vm7 = vcmp.eq.s32.totalorder %v242_v27, %v1348_v6  ;;  %v224_v30 = vadd.s32 16, %v1342_v1  ;;  %v240_v31 = vadd.s32 144, %v1342_v1 }
  0x4a   : > { %884 = vmatpush.msk.msra.mxu0 %vm299_vm10, %v1183_v11  ;;  %900 = vmatpush.msk.msra.mxu1 %vm315_vm11, %v1183_v11  ;;  %vm292_vm8 = vcmp.eq.s32.totalorder %v225_v28, %v1348_v6  ;;  %vm308_vm9 = vcmp.eq.s32.totalorder %v241_v29, %v1348_v6  ;;  %v223_v32 = vadd.s32 8, %v1342_v1  ;;  %v239_v33 = vadd.s32 136, %v1342_v1 }
  0x4b   : > { %vm291_vm10 = vcmp.eq.s32.totalorder %v224_v30, %v1348_v6  ;;  %vm307_vm11 = vcmp.eq.s32.totalorder %v240_v31, %v1348_v6  ;;  %v238_v34 = vadd.s32 128, %v1342_v1 }
  0x4c   : > { %885 = vmatpush.msk.msra.mxu0 %vm298_vm12, %v1183_v11  ;;  %901 = vmatpush.msk.msra.mxu1 %vm314_vm13, %v1183_v11  ;;  %vm290_vm12 = vcmp.eq.s32.totalorder %v223_v32, %v1348_v6  ;;  %vm306_vm13 = vcmp.eq.s32.totalorder %v239_v33, %v1348_v6 }
  0x4e   : > { %886 = vmatpush.msk.msra.mxu0 %vm297_vm14, %v1183_v11  ;;  %902 = vmatpush.msk.msra.mxu1 %vm313_vm15, %v1183_v11  ;;  %vm289_vm14 = vcmp.eq.s32.totalorder %v1342_v1, %v1348_v6  ;;  %vm305_vm15 = vcmp.eq.s32.totalorder %v238_v34, %v1348_v6 }
  0x50   : > { %887 = vmatpush.msk.msra.mxu0 %vm296_vm0, %v1183_v11  ;;  %903 = vmatpush.msk.msra.mxu1 %vm312_vm1, %v1183_v11 }
  0x52   : > { %888 = vmatpush.msk.msra.mxu0 %vm295_vm2, %v1183_v11  ;;  %904 = vmatpush.msk.msra.mxu1 %vm311_vm3, %v1183_v11 }
  0x54   : > { %889 = vmatpush.msk.msra.mxu0 %vm294_vm4, %v1183_v11  ;;  %905 = vmatpush.msk.msra.mxu1 %vm310_vm5, %v1183_v11 }
  0x56   : > { %890 = vmatpush.msk.msra.mxu0 %vm293_vm6, %v1183_v11  ;;  %906 = vmatpush.msk.msra.mxu1 %vm309_vm7, %v1183_v11 }
  0x58   : > { %891 = vmatpush.msk.msra.mxu0 %vm292_vm8, %v1183_v11  ;;  %907 = vmatpush.msk.msra.mxu1 %vm308_vm9, %v1183_v11 }
  0x5a   : > { %892 = vmatpush.msk.msra.mxu0 %vm291_vm10, %v1183_v11  ;;  %908 = vmatpush.msk.msra.mxu1 %vm307_vm11, %v1183_v11 }
  0x5c   : > { %893 = vmatpush.msk.msra.mxu0 %vm290_vm12, %v1183_v11  ;;  %909 = vmatpush.msk.msra.mxu1 %vm306_vm13, %v1183_v11 }
  0x5e   : > { %894 = vmatpush.msk.msra.mxu0 %vm289_vm14, %v1183_v11  ;;  %910 = vmatpush.msk.msra.mxu1 %vm305_vm15, %v1183_v11 }
  0x5f   : > { %543 = vmatmul.f32.vlgmr.msra.gmra.mxu0 %v457_v35  ;;  %563 = vmatmul.f32.vlgmr.msra.gmra.mxu1 %v458_v36 }
  0xdc   : > { %v544_v37 = vpop.f32.mrf.mxu0  ;;  %v564_v38 = vpop.f32.mrf.mxu1 }
  0xdd   : > { %v565_v39 = vadd.f32 %v564_v38, %v544_v37 }
  0xdf   : > { %573 = vst [vmem:[%s213_s6] sm:$0xff] %v565_v39 }
  0xe0   : > { %1097 = shalt.err (!%p1094_p2)
}
  0xe1   : > { %917 = dma.vmem_to_hbm [thread:$0]  (%p1267_p6), %s590_s11, 128, %s592_s9, %s575_s8  }
  0xe2 PF: > { %s603_s5 = sand.u32 1, %s1148_s14   ;;  %p1507_p3 = scmp.ge.s32.totalorder %s1180_s21, 2 }
  0xe3   : > { %s604_s24 = scalar_lea.sflag [#allocation8], %s603_s5 }
  0xe4   : > { %p928_p5 = pnand %p1507_p3, %p1273_p10 }
  0xe6   : > { %p929_p7 = pneg %p928_p5 }
  0xe8   : > { %1143 = dma.done.wait (%p929_p7), %s604_s24, 128  }
  0xe9   : > { %1145 = vsyncadd (%p929_p7), %s604_s24, 4294967168  ;;  %s21_s21 = sadd.s32 1, %s1180_s21   ;;  %s1508_s26 = sld [smem:[#allocation16_spill]] }
  0xea   : > { %p18_p8 = scmp.ge.s32.totalorder %s21_s21, 4   ;;  %s1509_s14 = smov %s1152_s15 }
  0xeb   : > { %s1510_s15 = smov %s1156_s16  ;;  %s1511_s16 = smov %s1306_s17 }
  0xec   : > { %s1512_s17 = smov %s1164_s18  ;;  %s1513_s18 = smov %s1168_s19 }
  0xed   : > { %s1514_s19 = smov %s1309_s22  ;;  %s1515_s20 = smov %s1176_s0 }
  0xee   :  { %20 = sbr.rel (!%p18_p8) target bundleno = 12 (0xc), region = 92 }
  0xef   : > { %s1516_s0 = smov %s1508_s26 }
  0xf3   :  { %610 = vsyncpa [#allocation7], 1 }
  0xf4   :  { %612 = vsyncpa [#allocation7 + $0x1], 1 }
  0xf5   :  { %613 = vsyncpa [#allocation10], 1 }
  0xf6   :  { %614 = vsyncpa [#allocation8], 1 }
  0xf7   :  { %616 = vsyncpa [#allocation8 + $0x1], 1 }

</bundles_post_ra>
